<compile_context>
chip_gen: v5e
topology: v5e:2x2
jax: 0.10.0
libtpu: 0.0.40
codegen_flags: <defaults>
</compile_context>

<pallas_src>
import jax
import jax.numpy as jnp
from jax.experimental import pallas as pl
from jax.experimental.pallas import tpu as pltpu


def _cdiv(a, b):
    return -(-a // b)


def _round_up(x, m):
    return _cdiv(x, m) * m


def _resident_spec(shape, index_map, single_buffer):
    """BlockSpec for a block whose index_map is constant across the grid.

    Pallas fetches it once; pl.Buffered(1) additionally drops the (useless)
    second pipeline buffer when the installed JAX supports it.
    """
    if single_buffer and hasattr(pl, "Buffered"):
        return pl.BlockSpec(shape, index_map, pipeline_mode=pl.Buffered(1))
    return pl.BlockSpec(shape, index_map)


# --------------------------------------------------------------------------
# Kernels
# --------------------------------------------------------------------------

def _dsconv_nhwc_kernel(body_ref, halo_ref, w_ref, b_ref, o_ref, xcol_ref):
    """In-kernel tap extraction + one MXU matmul (channels-last, C >= 128).

    body_ref: (2*TH, Wp, C)  padded-input rows [2*t*TH, 2*t*TH + 2*TH)
    halo_ref: (Wp, C)        padded-input row   2*(t+1)*TH
    w_ref:    (9*C, Cout)    resident weights, K ordered (kh, kw, cin)
    b_ref:    (1, Cout)      resident bias (f32)
    o_ref:    (TH, Wo, Cout) output row band
    xcol_ref: (TH*Wo, 9*C)   VMEM scratch: im2col matrix for this tile
    """
    TH, Wo, Cout = o_ref.shape
    C = body_ref.shape[-1]
    two_th = body_ref.shape[0]

    for kw in range(3):
        # Stride-2 column taps pulled straight from the VMEM block (strided
        # load on the sublane axis); rows are then selected by parity (cheap,
        # major-dim slab selects).
        cols = body_ref[:, pl.ds(kw, Wo, stride=2), :]        # (2*TH, Wo, C)
        hrow = halo_ref[pl.ds(kw, Wo, stride=2), :]           # (Wo, C)
        for kh in range(3):
            k0 = (kh * 3 + kw) * C
            if kh < 2:
                # local output row r uses padded row 2*r + kh (all inside body)
                xcol_ref[:, k0:k0 + C] = cols[kh:two_th:2].reshape(TH * Wo, C)
            else:
                # kh == 2: rows 0..TH-2 from the body, row TH-1 is the halo row.
                if TH > 1:
                    xcol_ref[:(TH - 1) * Wo, k0:k0 + C] = (
                        cols[2:two_th:2].reshape((TH - 1) * Wo, C))
                xcol_ref[(TH - 1) * Wo:, k0:k0 + C] = hrow

    acc = jnp.dot(xcol_ref[...], w_ref[...], preferred_element_type=jnp.float32)
    acc = acc + b_ref[...].astype(jnp.float32)
    o_ref[...] = acc.reshape(TH, Wo, Cout).astype(o_ref.dtype)


def _dsconv_km_kernel(x_ref, w_ref, b_ref, o_ref):
    """Small-C orientation: output pixels on the 128-lane axis.

    x_ref: (9*C, TM) im2col slab columns for this tile
    w_ref: (Cout, 9*C) resident weights
    b_ref: (Cout, 1)   resident bias (f32)
    o_ref: (Cout, TM)
    """
    acc = jnp.dot(w_ref[...], x_ref[...], preferred_element_type=jnp.float32)
    o_ref[...] = (acc + b_ref[...].astype(jnp.float32)).astype(o_ref.dtype)


# --------------------------------------------------------------------------
# Wrappers (layout plumbing only; all FLOPs run inside the kernels)
# --------------------------------------------------------------------------

def _downsample_channels_last(x_nchw, weight, bias, cdt, vmem_budget_bytes,
                              single_buffer_resident):
    B, C, H, W = x_nchw.shape
    Cout = weight.shape[0]
    Hp, Wp = H + 2, W + 2
    Ho, Wo = (H - 1) // 2 + 1, (W - 1) // 2 + 1
    out_dtype = x_nchw.dtype
    s = jnp.dtype(cdt).itemsize
    so = jnp.dtype(out_dtype).itemsize

    # Layout plumbing (XLA fuses transpose + reflect-pad + cast into one pass).
    x_nhwc = jnp.transpose(x_nchw, (0, 2, 3, 1))
    xp = jnp.pad(x_nhwc, ((0, 0), (1, 1), (1, 1), (0, 0)),
                 mode="reflect").astype(cdt)

    # ---- row-tile size TH from the per-step VMEM budget ----
    per_out_row = (2 * (2 * Wp * C * s)      # double-buffered body rows
                   + 2 * (Wo * Cout * so)    # double-buffered output rows
                   + 3 * (9 * Wo * C * s)    # im2col scratch + tap copies
                   + Wo * Cout * 4)          # f32 accumulator
    TH = max(1, min(int(vmem_budget_bytes) // per_out_row, Ho))
    nt = _cdiv(Ho, TH)
    if B * nt < 2 and Ho >= 2:        # make sure both v7x TensorCores get work
        nt = 2
    TH = _cdiv(Ho, nt)                # balanced row tiles
    nt = _cdiv(Ho, TH)
    Ho_pad = nt * TH

    # Make sure every body block [2*t*TH, 2*t*TH + 2*TH) is in bounds.
    rows_needed = 2 * TH * nt
    xp_body = xp if rows_needed <= Hp else jnp.pad(
        xp, ((0, 0), (0, rows_needed - Hp), (0, 0), (0, 0)))

    # Halo row for tile t is padded-input row 2*TH*(t+1) (clamped; values past
    # the last valid output row are never used).  Tiny: ~1/(2*TH) of the input.
    halo_idx = jnp.minimum(2 * TH * (jnp.arange(nt) + 1), Hp - 1)
    halo = jnp.take(xp, halo_idx, axis=1)                      # (B, nt, Wp, C)

    # K ordered (kh, kw, cin) to match the in-kernel im2col layout.
    w_mat = jnp.transpose(weight, (2, 3, 1, 0)).reshape(9 * C, Cout).astype(cdt)
    b_mat = bias.reshape(1, Cout).astype(jnp.float32)

    vmem_est = (2 * (2 * TH * Wp * C * s)        # body (double-buffered)
                + 2 * (Wp * C * s)               # halo (double-buffered)
                + 2 * (TH * Wo * Cout * so)      # output (double-buffered)
                + 2 * 9 * C * Cout * s + 4 * Cout  # weights + bias (worst case)
                + 3 * (TH * Wo * 9 * C * s)      # im2col scratch + tap copies
                + TH * Wo * Cout * 4)            # f32 accumulator
    vmem_limit = int(min(max(1.4 * vmem_est + (4 << 20), 32 << 20), 56 << 20))

    def _call(single_buffer):
        return pl.pallas_call(
            _dsconv_nhwc_kernel,
            out_shape=jax.ShapeDtypeStruct((B, Ho_pad, Wo, Cout), out_dtype),
            grid=(B, nt),
            in_specs=[
                pl.BlockSpec((None, 2 * TH, Wp, C), lambda b, t: (b, t, 0, 0)),
                pl.BlockSpec((None, None, Wp, C), lambda b, t: (b, t, 0, 0)),
                _resident_spec((9 * C, Cout), lambda b, t: (0, 0), single_buffer),
                _resident_spec((1, Cout), lambda b, t: (0, 0), single_buffer),
            ],
            out_specs=pl.BlockSpec((None, TH, Wo, Cout),
                                   lambda b, t: (b, t, 0, 0)),
            scratch_shapes=[pltpu.VMEM((TH * Wo, 9 * C), cdt)],
            compiler_params=pltpu.CompilerParams(
                dimension_semantics=("parallel", "parallel"),
                vmem_limit_bytes=vmem_limit),
        )(xp_body, halo, w_mat, b_mat)

    if single_buffer_resident:
        try:
            out = _call(True)
        except Exception:
            # pl.Buffered(1) not supported on this JAX build: retry with the
            # default (double-buffered) resident specs.
            out = _call(False)
    else:
        out = _call(False)

    out = out[:, :Ho]                 # drop padded rows (fuses with transpose)
    return jnp.transpose(out, (0, 3, 1, 2))


def _downsample_small_c(x_nchw, weight, bias, cdt, vmem_budget_bytes,
                        single_buffer_resident):
    B, C, H, W = x_nchw.shape
    Cout = weight.shape[0]
    Ho, Wo = (H - 1) // 2 + 1, (W - 1) // 2 + 1
    M = B * Ho * Wo
    K = 9 * C
    out_dtype = x_nchw.dtype
    s = jnp.dtype(cdt).itemsize
    so = jnp.dtype(out_dtype).itemsize

    # Build the (K, M) im2col slab directly from the padded NCHW input (no
    # NHWC round trip).  For small C this slab is small; the big-C path above
    # avoids it entirely.
    xp = jnp.pad(x_nchw, ((0, 0), (0, 0), (1, 1), (1, 1)), mode="reflect")
    taps = jnp.stack([xp[:, :, kh:kh + 2 * Ho:2, kw:kw + 2 * Wo:2]
                      for kh in range(3) for kw in range(3)],
                     axis=0)                                      # (9,B,C,Ho,Wo)
    x_slab = jnp.transpose(taps, (0, 2, 1, 3, 4)).reshape(K, M).astype(cdt)

    # ---- M tile from the VMEM budget; >= 2 balanced grid steps when possible
    per_lane = 2 * K * s + 2 * Cout * so + Cout * 4 + K * s
    tm = max(128, min((int(vmem_budget_bytes) // per_lane) // 128 * 128, 16384))
    nsteps = _cdiv(M, tm)
    if nsteps < 2 and M >= 256:       # keep both v7x TensorCores busy
        nsteps = 2
    tm = _round_up(_cdiv(M, nsteps), 128)
    nsteps = _cdiv(M, tm)
    Mp = nsteps * tm
    x_slab = jnp.pad(x_slab, ((0, 0), (0, Mp - M)))

    # Weight columns ordered (kh, kw, cin) to match the slab rows.
    w_mat = jnp.transpose(weight, (0, 2, 3, 1)).reshape(Cout, K).astype(cdt)
    b_mat = bias.reshape(Cout, 1).astype(jnp.float32)

    vmem_est = (2 * K * tm * s + 2 * Cout * tm * so
                + 2 * Cout * K * s + 4 * Cout
                + Cout * tm * 4 + K * tm * s)
    vmem_limit = int(min(max(1.4 * vmem_est + (4 << 20), 32 << 20), 56 << 20))

    def _call(single_buffer):
        return pl.pallas_call(
            _dsconv_km_kernel,
            out_shape=jax.ShapeDtypeStruct((Cout, Mp), out_dtype),
            grid=(nsteps,),
            in_specs=[
                pl.BlockSpec((K, tm), lambda i: (0, i)),
                _resident_spec((Cout, K), lambda i: (0, 0), single_buffer),
                _resident_spec((Cout, 1), lambda i: (0, 0), single_buffer),
            ],
            out_specs=pl.BlockSpec((Cout, tm), lambda i: (0, i)),
            compiler_params=pltpu.CompilerParams(
                dimension_semantics=("parallel",),
                vmem_limit_bytes=vmem_limit),
        )(x_slab, w_mat, b_mat)

    if single_buffer_resident:
        try:
            out = _call(True)
        except Exception:
            out = _call(False)
    else:
        out = _call(False)

    out = out[:, :M].reshape(Cout, B, Ho, Wo)
    return jnp.transpose(out, (1, 0, 2, 3))


def downsample_pallas(x_nchw, weight_oihw, bias, *,
                      compute_dtype=jnp.bfloat16,
                      channels_last_min_c=128,
                      vmem_budget_bytes=24 << 20,
                      single_buffer_resident=True):
    """ReflectionPad2d(1) + Conv2d(C, C, 3, stride=2) forward pass.

    compute_dtype: dtype of the streamed activations / resident weights fed to
      the MXU (accumulation is always f32, output keeps the input dtype).
      bfloat16 (default) halves HBM traffic and VMEM; pass jnp.float32 for
      tight f32 numerics.
    channels_last_min_c: C at or above which the in-kernel tap-extraction
      (channels-last) path is used; below it, the lane-dense (K, M) slab
      orientation is used (tiny C would waste the 128-lane axis otherwise).
    vmem_budget_bytes: per-step streamed/intermediate VMEM budget used to size
      tiles.  The default also fits v7x's 64 MiB VMEM; it can be raised to
      ~48-96 MiB on v5e/v6e (128 MiB VMEM).
    """
    B, C, H, W = x_nchw.shape
    Cout, Cin, KH, KW = weight_oihw.shape
    assert Cin == C and Cout == C and KH == 3 and KW == 3
    assert H >= 2 and W >= 2, "ReflectionPad2d(1) needs H >= 2 and W >= 2"
    cdt = jnp.dtype(compute_dtype if compute_dtype is not None else x_nchw.dtype)

    if C >= channels_last_min_c:
        return _downsample_channels_last(x_nchw, weight_oihw, bias, cdt,
                                         vmem_budget_bytes,
                                         single_buffer_resident)
    return _downsample_small_c(x_nchw, weight_oihw, bias, cdt,
                               vmem_budget_bytes, single_buffer_resident)


# --------------------------------------------------------------------------
# Reference + self-test
# --------------------------------------------------------------------------

def _reference(x_nchw, weight_oihw, bias):
    xp = jnp.pad(x_nchw, ((0, 0), (0, 0), (1, 1), (1, 1)), mode="reflect")
    y = jax.lax.conv_general_dilated(
        xp, weight_oihw, window_strides=(2, 2), padding="VALID",
        dimension_numbers=("NCHW", "OIHW", "NCHW"))
    return y + bias[None, :, None, None]


def _init_params(key, C):
    kw, kb = jax.random.split(key)
    fan_in = C * 9
    bound = 1.0 / (fan_in ** 0.5)
    w = jax.random.uniform(kw, (C, C, 3, 3), jnp.float32, -bound, bound)
    b = jax.random.uniform(kb, (C,), jnp.float32, -bound, bound)
    return w, b


if __name__ == "__main__":
    key = jax.random.PRNGKey(0)
    k1, k2, k3, k4 = jax.random.split(key, 4)

    # Spec shapes: batch=2, channels=4, spatial=16 -> small-C (lane-dense) path.
    x_small = jax.random.normal(k1, (2, 4, 16, 16), dtype=jnp.float32)
    w_small, b_small = _init_params(k2, 4)

    # Wider-channel config exercising the in-kernel tap-extraction path.
    x_wide = jax.random.normal(k3, (2, 128, 16, 16), dtype=jnp.float32)
    w_wide, b_wide = _init_params(k4, 128)

    cases = [
        ("small-C  f32 ", x_small, w_small, b_small, jnp.float32, 5e-2),
        ("small-C  bf16", x_small, w_small, b_small, jnp.bfloat16, 8e-2),
        ("chan-last f32", x_wide, w_wide, b_wide, jnp.float32, 8e-2),
        ("chan-last bf16", x_wide, w_wide, b_wide, jnp.bfloat16, 1.5e-1),
    ]
    for name, x, w, b, cdt, tol in cases:
        out = jax.block_until_ready(
            downsample_pallas(x, w, b, compute_dtype=cdt))
        ref = _reference(x, w, b)
        assert out.shape == ref.shape, (name, out.shape, ref.shape)
        err = float(jnp.max(jnp.abs(out - ref)))
        assert err <= tol, (name, err, tol)

    print("KERNEL_OK")
</pallas_src>

<mosaic_0001>
module attributes {stable_mosaic.version = 11 : i64} {
  func.func @_dsconv_km_kernel(%arg0: i32, %arg1: memref<36x128xf32, #tpu.memory_space<vmem>>, %arg2: memref<4x36xf32, #tpu.memory_space<vmem>>, %arg3: memref<4x1xf32, #tpu.memory_space<vmem>>, %arg4: memref<4x128xf32, #tpu.memory_space<vmem>>) attributes {dimension_semantics = [#tpu.dimension_semantics<parallel>], iteration_bounds = array<i64: 1>, scalar_prefetch = 0 : i64, scratch_operands = 0 : i64, tpu.core_type = #tpu.core_type<tc>, window_params = [{transform_indices = @transform_0, window_bounds = array<i64: 36, 128>}, {pipeline_mode = #tpu.pipeline_mode<synchronous>, transform_indices = @transform_1, window_bounds = array<i64: 4, 36>}, {pipeline_mode = #tpu.pipeline_mode<synchronous>, transform_indices = @transform_2, window_bounds = array<i64: 4, 1>}, {transform_indices = @transform_3, window_bounds = array<i64: 4, 128>}]} {
    %c0 = arith.constant 0 : index
    %c0_0 = arith.constant 0 : index
    %0 = vector.load %arg2[%c0, %c0_0] : memref<4x36xf32, #tpu.memory_space<vmem>>, vector<4x36xf32>
    %c0_1 = arith.constant 0 : index
    %c0_2 = arith.constant 0 : index
    %1 = vector.load %arg1[%c0_1, %c0_2] : memref<36x128xf32, #tpu.memory_space<vmem>>, vector<36x128xf32>
    %cst = arith.constant dense<0.000000e+00> : vector<4x128xf32>
    %2 = tpu.matmul %0, %1, %cst {dimension_numbers = #tpu.dot_dimension_numbers<[1], [0], [0], [1], [0, 0, 1, 1], [], []>} : vector<4x36xf32>, vector<36x128xf32>, vector<4x128xf32> -> vector<4x128xf32>
    %c0_3 = arith.constant 0 : index
    %c0_4 = arith.constant 0 : index
    %3 = vector.load %arg3[%c0_3, %c0_4] : memref<4x1xf32, #tpu.memory_space<vmem>>, vector<4x1xf32>
    %4 = vector.broadcast %3 : vector<4x1xf32> to vector<4x128xf32>
    %5 = arith.addf %2, %4 : vector<4x128xf32>
    %c0_5 = arith.constant 0 : index
    %c0_6 = arith.constant 0 : index
    %6 = vector.load %arg4[%c0_5, %c0_6] : memref<4x128xf32, #tpu.memory_space<vmem>>, vector<4x128xf32>
    tpu.vector_store %arg4[%c0_5, %c0_6], %5 {strides = array<i32>} : memref<4x128xf32, #tpu.memory_space<vmem>>, vector<4x128xf32>,
    return
  }
  func.func @transform_0(%arg0: i32) -> (i32, i32) {
    %c0_i32 = arith.constant 0 : i32
    %c0_i32_0 = arith.constant 0 : i32
    return %c0_i32, %arg0 : i32, i32
  }
  func.func @transform_1(%arg0: i32) -> (i32, i32) {
    %c0_i32 = arith.constant 0 : i32
    %c0_i32_0 = arith.constant 0 : i32
    %c0_i32_1 = arith.constant 0 : i32
    return %c0_i32, %c0_i32_0 : i32, i32
  }
  func.func @transform_2(%arg0: i32) -> (i32, i32) {
    %c0_i32 = arith.constant 0 : i32
    %c0_i32_0 = arith.constant 0 : i32
    %c0_i32_1 = arith.constant 0 : i32
    return %c0_i32, %c0_i32_0 : i32, i32
  }
  func.func @transform_3(%arg0: i32) -> (i32, i32) {
    %c0_i32 = arith.constant 0 : i32
    %c0_i32_0 = arith.constant 0 : i32
    return %c0_i32, %arg0 : i32, i32
  }
}

module attributes {stable_mosaic.version = 11 : i64} {
  func.func @_dsconv_km_kernel(%arg0: i32, %arg1: memref<36x128xf32, #tpu.memory_space<vmem>>, %arg2: memref<4x36xf32, #tpu.memory_space<vmem>>, %arg3: memref<4x1xf32, #tpu.memory_space<vmem>>, %arg4: memref<4x128xf32, #tpu.memory_space<vmem>>) attributes {dimension_semantics = [#tpu.dimension_semantics<parallel>], iteration_bounds = array<i64: 1>, scalar_prefetch = 0 : i64, scratch_operands = 0 : i64, tpu.core_type = #tpu.core_type<tc>, window_params = [{transform_indices = @transform_0, window_bounds = array<i64: 36, 128>}, {pipeline_mode = #tpu.pipeline_mode<synchronous>, transform_indices = @transform_1, window_bounds = array<i64: 4, 36>}, {pipeline_mode = #tpu.pipeline_mode<synchronous>, transform_indices = @transform_2, window_bounds = array<i64: 4, 1>}, {transform_indices = @transform_3, window_bounds = array<i64: 4, 128>}]} {
    %c0 = arith.constant 0 : index
    %c0_0 = arith.constant 0 : index
    %0 = vector.load %arg2[%c0, %c0_0] : memref<4x36xf32, #tpu.memory_space<vmem>>, vector<4x36xf32>
    %c0_1 = arith.constant 0 : index
    %c0_2 = arith.constant 0 : index
    %1 = vector.load %arg1[%c0_1, %c0_2] : memref<36x128xf32, #tpu.memory_space<vmem>>, vector<36x128xf32>
    %cst = arith.constant dense<0.000000e+00> : vector<4x128xf32>
    %2 = tpu.matmul %0, %1, %cst {dimension_numbers = #tpu.dot_dimension_numbers<[1], [0], [0], [1], [0, 0, 1, 1], [], []>} : vector<4x36xf32>, vector<36x128xf32>, vector<4x128xf32> -> vector<4x128xf32>
    %c0_3 = arith.constant 0 : index
    %c0_4 = arith.constant 0 : index
    %3 = vector.load %arg3[%c0_3, %c0_4] : memref<4x1xf32, #tpu.memory_space<vmem>>, vector<4x1xf32>
    %4 = vector.broadcast %3 : vector<4x1xf32> to vector<4x128xf32>
    %5 = arith.addf %2, %4 : vector<4x128xf32>
    %c0_5 = arith.constant 0 : index
    %c0_6 = arith.constant 0 : index
    %6 = vector.load %arg4[%c0_5, %c0_6] : memref<4x128xf32, #tpu.memory_space<vmem>>, vector<4x128xf32>
    tpu.vector_store %arg4[%c0_5, %c0_6], %5 {strides = array<i32>} : memref<4x128xf32, #tpu.memory_space<vmem>>, vector<4x128xf32>,
    return
  }
  func.func @transform_0(%arg0: i32) -> (i32, i32) {
    %c0_i32 = arith.constant 0 : i32
    %c0_i32_0 = arith.constant 0 : i32
    return %c0_i32, %arg0 : i32, i32
  }
  func.func @transform_1(%arg0: i32) -> (i32, i32) {
    %c0_i32 = arith.constant 0 : i32
    %c0_i32_0 = arith.constant 0 : i32
    %c0_i32_1 = arith.constant 0 : i32
    return %c0_i32, %c0_i32_0 : i32, i32
  }
  func.func @transform_2(%arg0: i32) -> (i32, i32) {
    %c0_i32 = arith.constant 0 : i32
    %c0_i32_0 = arith.constant 0 : i32
    %c0_i32_1 = arith.constant 0 : i32
    return %c0_i32, %c0_i32_0 : i32, i32
  }
  func.func @transform_3(%arg0: i32) -> (i32, i32) {
    %c0_i32 = arith.constant 0 : i32
    %c0_i32_0 = arith.constant 0 : i32
    return %c0_i32, %arg0 : i32, i32
  }
}

</mosaic_0001>

<bundles_post_ra>
// kernel: tpu_custom_call.1
= control target key start
LH: loop header
LB: loop body
LE: loop exit
PB: predicated region body
PF: predicated region fallthrough
CT: control target
= control target key end

     0   :  { %8 = vsyncpa [#allocation3], 0  ;;  %s186_s0 = inlined_call_operand.hbm [shape: f32[36,128], index: 0, kind: input, shape index: {}]   ;;  %s187_s1 = inlined_call_operand.vmem [shape: f32[4,36], index: 1, kind: input, shape index: {}]   ;;  %s188_s2 = inlined_call_operand.vmem [shape: f32[4,1], index: 2, kind: input, shape index: {}]   ;;  %s189_s3 = inlined_call_operand.hbm [shape: f32[4,128], index: 3, kind: output, shape index: {}]  }
   0x1   :  { %9 = vsyncpa [#allocation4], 0  ;;  %s14_s14 = sshll.u32 %s186_s0, 4  ;;  %s149_s15 = smov [#allocation2]   ;;  %s15_s14 = int_to_ptr.hbm [resolvable:$true] %s14_s14 }
   0x2   :  { %s16_s16 = sshll.u32 %s149_s15, 4  ;;  %s150_s17 = smov 128   ;;  %s17_s16 = int_to_ptr.vmem [resolvable:$true] %s16_s16 }
   0x3   :  { %s151_s18 = smov 8  }
   0x4   :  { %22 = dma.hbm_to_vmem [thread:$0]  %s15_s14, 640, %s17_s16, [#allocation3], %s150_s17, %s150_s17, %s151_s18  }
   0x5   :  { %145 = dma.done.wait [#allocation3], 640  }
   0x6   :  { %146 = vsyncadd [#allocation3], 4294966656  ;;  %v152_v0 = vmov 0   ;;  %vm47_vm0 = vcmask 1043456   ;;  %v36_v1 = vld [vmem:[#allocation2 + $0x20] sm:$0xf] }
   0x7   :  { %96 = vset.pattern.permute.xlu0 %v152_v0  ;;  %v35_v2 = vld [vmem:[#allocation2 + $0x18] sm:$0xff]  ;;  %89 = vmatpush.msk.msra.mxu0 %vm47_vm0, %v36_v1  ;;  %v34_v3 = vld [vmem:[#allocation2 + $0x10] sm:$0xff]  ;;  %v37_v4 = vld [vmem:[%s188_s2] sm:$0xf]  ;;  %vm43_vm1 = vcmask 293888   ;;  %s153_s22 = smov [#allocation5]  }
   0x8   :  { %40 = vperm.xlu0 %96, %v37_v4   ;;  %v33_v5 = vld [vmem:[#allocation2 + $0x8] sm:$0xff]  ;;  %v32_v6 = vld [vmem:[#allocation2] sm:$0xff]  ;;  %s77_s23 = sshll.u32 %s153_s22, 4  ;;  %s79_s2 = sshll.u32 %s189_s3, 4  ;;  %s78_s23 = int_to_ptr.vmem [resolvable:$true] %s77_s23  ;;  %s80_s2 = int_to_ptr.hbm [resolvable:$true] %s79_s2 }
   0x9   :  { %63 = vmatpush.msra.mxu0 %v35_v2  ;;  %v31_v7 = vld [vmem:[%s187_s1] sm:$0xf] }
   0xb   :  { %64 = vmatpush.msra.mxu0 %v34_v3 }
   0xd   :  { %65 = vmatpush.msra.mxu0 %v33_v5 }
   0xf   :  { %66 = vmatpush.msra.mxu0 %v32_v6 }
  0x10   :  { %90 = vmatmul.msk.f32.vlgmr.msra.gmra.mxu0 %vm43_vm1, %v31_v7 }
  0x7a   :  { %v41_v8 = vpop.permute.xlu0 %40 }
  0x8d   :  { %v68_v9 = vpop.f32.mrf.mxu0 }
  0x8e   :  { %v69_v10 = vadd.f32 %v68_v9, %v41_v8 }
  0x90   :  { %71 = vst [vmem:[#allocation5] sm:$0xf] %v69_v10 }
  0x91   :  { %82 = dma.vmem_to_hbm [thread:$0]  %s78_s23, 64, %s80_s2, [#allocation4]  }
  0x92   :  { %147 = dma.done.wait [#allocation4], 64  }
  0x93   :  { %148 = vsyncadd [#allocation4], 4294967232 }
  0x94   :  { %87 = vsyncpa [#allocation3], 1 }
  0x95   :  { %88 = vsyncpa [#allocation4], 1 }

// kernel: tpu_custom_call.1
= control target key start
LH: loop header
LB: loop body
LE: loop exit
PB: predicated region body
PF: predicated region fallthrough
CT: control target
= control target key end

     0   :  { %8 = vsyncpa [#allocation3], 0  ;;  %s186_s0 = inlined_call_operand.hbm [shape: f32[36,128], index: 0, kind: input, shape index: {}]   ;;  %s187_s1 = inlined_call_operand.vmem [shape: f32[4,36], index: 1, kind: input, shape index: {}]   ;;  %s188_s2 = inlined_call_operand.vmem [shape: f32[4,1], index: 2, kind: input, shape index: {}]   ;;  %s189_s3 = inlined_call_operand.hbm [shape: f32[4,128], index: 3, kind: output, shape index: {}]  }
   0x1   :  { %9 = vsyncpa [#allocation4], 0  ;;  %s14_s14 = sshll.u32 %s186_s0, 4  ;;  %s149_s15 = smov [#allocation2]   ;;  %s15_s14 = int_to_ptr.hbm [resolvable:$true] %s14_s14 }
   0x2   :  { %s16_s16 = sshll.u32 %s149_s15, 4  ;;  %s150_s17 = smov 128   ;;  %s17_s16 = int_to_ptr.vmem [resolvable:$true] %s16_s16 }
   0x3   :  { %s151_s18 = smov 8  }
   0x4   :  { %22 = dma.hbm_to_vmem [thread:$0]  %s15_s14, 640, %s17_s16, [#allocation3], %s150_s17, %s150_s17, %s151_s18  }
   0x5   :  { %145 = dma.done.wait [#allocation3], 640  }
   0x6   :  { %146 = vsyncadd [#allocation3], 4294966656  ;;  %v152_v0 = vmov 0   ;;  %vm47_vm0 = vcmask 1043456   ;;  %v36_v1 = vld [vmem:[#allocation2 + $0x20] sm:$0xf] }
   0x7   :  { %96 = vset.pattern.permute.xlu0 %v152_v0  ;;  %v35_v2 = vld [vmem:[#allocation2 + $0x18] sm:$0xff]  ;;  %89 = vmatpush.msk.msra.mxu0 %vm47_vm0, %v36_v1  ;;  %v34_v3 = vld [vmem:[#allocation2 + $0x10] sm:$0xff]  ;;  %v37_v4 = vld [vmem:[%s188_s2] sm:$0xf]  ;;  %vm43_vm1 = vcmask 293888   ;;  %s153_s22 = smov [#allocation5]  }
   0x8   :  { %40 = vperm.xlu0 %96, %v37_v4   ;;  %v33_v5 = vld [vmem:[#allocation2 + $0x8] sm:$0xff]  ;;  %v32_v6 = vld [vmem:[#allocation2] sm:$0xff]  ;;  %s77_s23 = sshll.u32 %s153_s22, 4  ;;  %s79_s2 = sshll.u32 %s189_s3, 4  ;;  %s78_s23 = int_to_ptr.vmem [resolvable:$true] %s77_s23  ;;  %s80_s2 = int_to_ptr.hbm [resolvable:$true] %s79_s2 }
   0x9   :  { %63 = vmatpush.msra.mxu0 %v35_v2  ;;  %v31_v7 = vld [vmem:[%s187_s1] sm:$0xf] }
   0xb   :  { %64 = vmatpush.msra.mxu0 %v34_v3 }
   0xd   :  { %65 = vmatpush.msra.mxu0 %v33_v5 }
   0xf   :  { %66 = vmatpush.msra.mxu0 %v32_v6 }
  0x10   :  { %90 = vmatmul.msk.f32.vlgmr.msra.gmra.mxu0 %vm43_vm1, %v31_v7 }
  0x7a   :  { %v41_v8 = vpop.permute.xlu0 %40 }
  0x8d   :  { %v68_v9 = vpop.f32.mrf.mxu0 }
  0x8e   :  { %v69_v10 = vadd.f32 %v68_v9, %v41_v8 }
  0x90   :  { %71 = vst [vmem:[#allocation5] sm:$0xf] %v69_v10 }
  0x91   :  { %82 = dma.vmem_to_hbm [thread:$0]  %s78_s23, 64, %s80_s2, [#allocation4]  }
  0x92   :  { %147 = dma.done.wait [#allocation4], 64  }
  0x93   :  { %148 = vsyncadd [#allocation4], 4294967232 }
  0x94   :  { %87 = vsyncpa [#allocation3], 1 }
  0x95   :  { %88 = vsyncpa [#allocation4], 1 }

</bundles_post_ra>
